<compile_context>
chip_gen: v7x
topology: tpu7x:2x2x1
jax: 0.10.0
libtpu: 0.0.40
codegen_flags: <defaults>
</compile_context>

<pallas_src>
import functools
import math

import jax
import jax.numpy as jnp
from jax import lax
from jax.experimental import pallas as pl
from jax.experimental.pallas import tpu as pltpu


def _make_kernel(snr_img, snr_cap, l_img, l_cap):
    """Build the fused kernel body, noise paths specialized at trace time."""
    use_noise = (snr_img is not None) or (snr_cap is not None)
    f_img = 0.0 if snr_img is None else float(10.0 ** (-float(snr_img) / 10.0))
    f_cap = 0.0 if snr_cap is None else float(10.0 ** (-float(snr_cap) / 10.0))

    def kernel(*refs):
        if use_noise:
            x_ref, n_ref, we_ref, be_ref, wd_ref, bd_ref, out_ref = refs
        else:
            x_ref, we_ref, be_ref, wd_ref, bd_ref, out_ref = refs

        # ---- fused encoders: one MXU pass on the block-diagonal weight ----
        z = jnp.dot(x_ref[...], we_ref[...], preferred_element_type=jnp.float32)
        z = z + be_ref[...].astype(jnp.float32)           # [B, l_img + l_cap], f32

        # ---- AWGN channel: z += unit_noise * sqrt(10**(-snr/10) * power) ----
        if use_noise:
            b, l_tot = z.shape
            col = lax.broadcasted_iota(jnp.int32, (1, l_tot), 1)
            in_img = col < l_img                          # [1, l_tot] bool
            zz = z * z
            # signal_power() of each post-bias latent block (matches torch ref).
            p_img = jnp.sum(jnp.where(in_img, zz, 0.0)) * jnp.float32(1.0 / (b * l_img))
            p_cap = jnp.sum(jnp.where(in_img, 0.0, zz)) * jnp.float32(1.0 / (b * l_cap))
            std_img = jnp.sqrt(jnp.float32(f_img) * p_img)
            std_cap = jnp.sqrt(jnp.float32(f_cap) * p_cap)
            std = jnp.where(in_img, std_img, std_cap)     # per-column std, f32
            z = z + n_ref[...].astype(jnp.float32) * std

        # ---- fused decoders: one MXU pass on the block-diagonal weight ----
        # NOTE: if the model dtype is bf16 the noise-injected f32 latent is
        # downcast before the second matmul (documented precision deviation).
        y = jnp.dot(z.astype(wd_ref.dtype), wd_ref[...],
                    preferred_element_type=jnp.float32)
        y = y + bd_ref[...].astype(jnp.float32)
        out_ref[...] = y.astype(out_ref.dtype)            # lane-dense [B, 2*D] store

    return kernel


def _forward_impl(x_img, x_cap, w_enc, b_enc, w_dec, b_dec, seed,
                  *, snr_img, snr_cap, l_img, l_cap, dtype):
    """Jitted forward: concat -> (RNG) -> fused pallas kernel -> split."""
    B, D = x_img.shape
    l_tot = l_img + l_cap
    use_noise = (snr_img is not None) or (snr_cap is not None)

    x_cat = jnp.concatenate([x_img.astype(dtype), x_cap.astype(dtype)], axis=-1)

    inputs = [x_cat]
    if use_noise:
        # Unit-variance noise; scaled in-kernel by the data-dependent std.
        unit_noise = jax.random.normal(jax.random.PRNGKey(seed), (B, l_tot), jnp.float32)
        inputs.append(unit_noise)
    inputs += [w_enc, b_enc, w_dec, b_dec]

    kernel = _make_kernel(snr_img, snr_cap, l_img, l_cap)

    out_dtype = dtype
    flops = 2 * B * (2 * D) * l_tot + 2 * B * l_tot * (2 * D)
    bytes_accessed = sum(int(a.size) * jnp.dtype(a.dtype).itemsize for a in inputs) \
        + B * 2 * D * jnp.dtype(out_dtype).itemsize
    cost = pl.CostEstimate(flops=int(flops),
                           transcendentals=2 if use_noise else 0,
                           bytes_accessed=int(bytes_accessed))

    # Whole-array VMEM specs are (double-)buffered; raise the scoped limit only
    # when the footprint actually needs it (future large-B use).
    compiler_params = None
    if 4 * bytes_accessed > (16 << 20):
        compiler_params = pltpu.CompilerParams(
            vmem_limit_bytes=int(min(4 * bytes_accessed, 64 << 20)))

    vmem = pl.BlockSpec(memory_space=pltpu.MemorySpace.VMEM)
    y = pl.pallas_call(
        kernel,
        out_shape=jax.ShapeDtypeStruct((B, 2 * D), out_dtype),
        in_specs=[vmem] * len(inputs),
        out_specs=vmem,
        compiler_params=compiler_params,
        cost_estimate=cost,
    )(*inputs)

    return y[:, :D], y[:, D:]


def _linear_params(k_w, k_b, fan_in, fan_out, dtype):
    """nn.Linear-style init: U(-1/sqrt(fan_in), 1/sqrt(fan_in)); W stored as [in, out]."""
    bound = 1.0 / math.sqrt(fan_in)
    w = jax.random.uniform(k_w, (fan_in, fan_out), dtype, -bound, bound)
    b = jax.random.uniform(k_b, (1, fan_out), dtype, -bound, bound)
    return w, b


class AutoEncoderChannelPallas:
    """JAX/Pallas port of AutoEncoderChannel's forward pass (single fused kernel)."""

    def __init__(self, input_embed_dim, out_feature_dims, channel_snr,
                 dtype=jnp.float32, key=None):
        if key is None:
            key = jax.random.PRNGKey(0)
        self.channel_snr = channel_snr
        self.dtype = dtype
        d = input_embed_dim
        l_img = out_feature_dims[0][0]
        l_cap = out_feature_dims[1][0]
        l_tot = l_img + l_cap

        ks = jax.random.split(key, 8)
        self.w_enc_img, self.b_enc_img = _linear_params(ks[0], ks[1], d, l_img, dtype)
        self.w_enc_cap, self.b_enc_cap = _linear_params(ks[2], ks[3], d, l_cap, dtype)
        self.w_dec_img, self.b_dec_img = _linear_params(ks[4], ks[5], l_img, d, dtype)
        self.w_dec_cap, self.b_dec_cap = _linear_params(ks[6], ks[7], l_cap, d, dtype)

        # --- block-diagonal packing, done once ---
        w_enc = jnp.zeros((2 * d, l_tot), dtype)
        w_enc = w_enc.at[:d, :l_img].set(self.w_enc_img)
        w_enc = w_enc.at[d:, l_img:].set(self.w_enc_cap)
        self.w_enc = w_enc
        self.b_enc = jnp.concatenate([self.b_enc_img, self.b_enc_cap], axis=-1)

        w_dec = jnp.zeros((l_tot, 2 * d), dtype)
        w_dec = w_dec.at[:l_img, :d].set(self.w_dec_img)
        w_dec = w_dec.at[l_img:, d:].set(self.w_dec_cap)
        self.w_dec = w_dec
        self.b_dec = jnp.concatenate([self.b_dec_img, self.b_dec_cap], axis=-1)

        snr_img, snr_cap = channel_snr
        self._forward = jax.jit(functools.partial(
            _forward_impl,
            snr_img=snr_img, snr_cap=snr_cap,
            l_img=l_img, l_cap=l_cap, dtype=dtype))

    def __call__(self, image_feature, text_feature, is_val=False, seed=1234, cap_idx=0):
        # TODO(synk): torch's is_val path draws noise with Python's random.gauss loop;
        # both paths here draw from jax.random.normal (same N(0, std) distribution,
        # different bit-stream).
        del is_val, cap_idx
        seed_arr = jnp.asarray(seed, dtype=jnp.int32)
        return self._forward(image_feature, text_feature,
                             self.w_enc, self.b_enc, self.w_dec, self.b_dec,
                             seed_arr)


if __name__ == "__main__":
    key = jax.random.PRNGKey(0)
    k_img, k_txt, k_params = jax.random.split(key, 3)

    batch = 8
    input_embed_dim = 32
    out_feature_dims = [[16], [16]]   # [latent_img], [latent_cap]

    image_feature = jax.random.normal(k_img, (batch, input_embed_dim), jnp.float32)
    text_feature = jax.random.normal(k_txt, (batch, input_embed_dim), jnp.float32)

    # --- noisy channel: both branches get AWGN ---
    model_noisy = AutoEncoderChannelPallas(input_embed_dim, out_feature_dims,
                                           channel_snr=(10.0, 5.0),
                                           dtype=jnp.float32, key=k_params)
    x_img, x_cap = model_noisy(image_feature, text_feature, is_val=False, seed=1234)
    jax.block_until_ready(x_img)
    jax.block_until_ready(x_cap)
    assert x_img.shape == (batch, input_embed_dim)
    assert x_cap.shape == (batch, input_embed_dim)
    assert bool(jnp.all(jnp.isfinite(x_img))) and bool(jnp.all(jnp.isfinite(x_cap)))

    # second call with the same seed hits the jit cache and is deterministic
    x_img2, x_cap2 = model_noisy(image_feature, text_feature, seed=1234)
    jax.block_until_ready(x_img2)
    assert bool(jnp.allclose(x_img, x_img2)) and bool(jnp.allclose(x_cap, x_cap2))

    # --- noise-free channel: noise codegen skipped; check vs pure-JAX reference ---
    model_clean = AutoEncoderChannelPallas(input_embed_dim, out_feature_dims,
                                           channel_snr=(None, None),
                                           dtype=jnp.float32, key=k_params)
    y_img, y_cap = model_clean(image_feature, text_feature)
    jax.block_until_ready(y_img)
    jax.block_until_ready(y_cap)
    assert y_img.shape == (batch, input_embed_dim)
    assert y_cap.shape == (batch, input_embed_dim)

    ref_img = (image_feature @ model_clean.w_enc_img + model_clean.b_enc_img) \
        @ model_clean.w_dec_img + model_clean.b_dec_img
    ref_cap = (text_feature @ model_clean.w_enc_cap + model_clean.b_enc_cap) \
        @ model_clean.w_dec_cap + model_clean.b_dec_cap
    # Loose tolerance: host XLA dot and in-kernel MXU dot may use different
    # f32->bf16-pass decompositions; structural bugs would show O(1) error.
    assert bool(jnp.allclose(y_img, ref_img, rtol=2e-2, atol=2e-2))
    assert bool(jnp.allclose(y_cap, ref_cap, rtol=2e-2, atol=2e-2))

    print("KERNEL_OK")
</pallas_src>

<mosaic_0001>
module attributes {stable_mosaic.version = 11 : i64} {
  func.func @kernel(%arg0: memref<8x64xf32, #tpu.memory_space<vmem>>, %arg1: memref<8x32xf32, #tpu.memory_space<vmem>>, %arg2: memref<64x32xf32, #tpu.memory_space<vmem>>, %arg3: memref<1x32xf32, #tpu.memory_space<vmem>>, %arg4: memref<32x64xf32, #tpu.memory_space<vmem>>, %arg5: memref<1x64xf32, #tpu.memory_space<vmem>>, %arg6: memref<8x64xf32, #tpu.memory_space<vmem>>) attributes {dimension_semantics = [], scalar_prefetch = 0 : i64, scratch_operands = 0 : i64, tpu.core_type = #tpu.core_type<tc>} {
    %c0 = arith.constant 0 : index
    %c0_0 = arith.constant 0 : index
    %0 = vector.load %arg0[%c0, %c0_0] : memref<8x64xf32, #tpu.memory_space<vmem>>, vector<8x64xf32>
    %c0_1 = arith.constant 0 : index
    %c0_2 = arith.constant 0 : index
    %1 = vector.load %arg2[%c0_1, %c0_2] : memref<64x32xf32, #tpu.memory_space<vmem>>, vector<64x32xf32>
    %cst = arith.constant dense<0.000000e+00> : vector<8x32xf32>
    %2 = tpu.matmul %0, %1, %cst {dimension_numbers = #tpu.dot_dimension_numbers<[1], [0], [0], [1], [0, 0, 1, 1], [], []>} : vector<8x64xf32>, vector<64x32xf32>, vector<8x32xf32> -> vector<8x32xf32>
    %c0_3 = arith.constant 0 : index
    %c0_4 = arith.constant 0 : index
    %3 = vector.load %arg3[%c0_3, %c0_4] : memref<1x32xf32, #tpu.memory_space<vmem>>, vector<1x32xf32>
    %4 = vector.broadcast %3 : vector<1x32xf32> to vector<8x32xf32>
    %5 = arith.addf %2, %4 : vector<8x32xf32>
    %6 = tpu.iota {dimensions = array<i32: 1>} : vector<1x32xi32>
    %c16_i32 = arith.constant 16 : i32
    %7 = vector.broadcast %c16_i32 : i32 to vector<1x32xi32>
    %8 = arith.cmpi slt, %6, %7 : vector<1x32xi32>
    %9 = arith.mulf %5, %5 : vector<8x32xf32>
    %cst_5 = arith.constant 0.000000e+00 : f32
    %10 = vector.shape_cast %8 : vector<1x32xi1> to vector<1x32xi1>
    %11 = vector.broadcast %10 : vector<1x32xi1> to vector<8x32xi1>
    %12 = vector.broadcast %cst_5 : f32 to vector<8x32xf32>
    %13 = arith.select %11, %9, %12 : vector<8x32xi1>, vector<8x32xf32>
    %14 = vector.shape_cast %13 : vector<8x32xf32> to vector<1x8x32xf32>
    %cst_6 = arith.constant dense<0.000000e+00> : vector<1xf32>
    %15 = vector.multi_reduction <add>, %14, %cst_6 [1, 2] : vector<1x8x32xf32> to vector<1xf32>
    %16 = vector.shape_cast %15 : vector<1xf32> to vector<1x1x1xf32>
    %17 = vector.extract %16[0, 0, 0] : f32 from vector<1x1x1xf32>
    %cst_7 = arith.constant 7.812500e-03 : f32
    %18 = arith.mulf %17, %cst_7 : f32
    %cst_8 = arith.constant 0.000000e+00 : f32
    %19 = vector.shape_cast %8 : vector<1x32xi1> to vector<1x32xi1>
    %20 = vector.broadcast %19 : vector<1x32xi1> to vector<8x32xi1>
    %21 = vector.broadcast %cst_8 : f32 to vector<8x32xf32>
    %22 = arith.select %20, %21, %9 : vector<8x32xi1>, vector<8x32xf32>
    %23 = vector.shape_cast %22 : vector<8x32xf32> to vector<1x8x32xf32>
    %cst_9 = arith.constant dense<0.000000e+00> : vector<1xf32>
    %24 = vector.multi_reduction <add>, %23, %cst_9 [1, 2] : vector<1x8x32xf32> to vector<1xf32>
    %25 = vector.shape_cast %24 : vector<1xf32> to vector<1x1x1xf32>
    %26 = vector.extract %25[0, 0, 0] : f32 from vector<1x1x1xf32>
    %cst_10 = arith.constant 7.812500e-03 : f32
    %27 = arith.mulf %26, %cst_10 : f32
    %cst_11 = arith.constant 1.000000e-01 : f32
    %28 = arith.mulf %cst_11, %18 : f32
    %29 = math.sqrt %28 : f32
    %cst_12 = arith.constant 0.316227764 : f32
    %30 = arith.mulf %cst_12, %27 : f32
    %31 = math.sqrt %30 : f32
    %32 = vector.broadcast %29 : f32 to vector<1x32xf32>
    %33 = vector.broadcast %31 : f32 to vector<1x32xf32>
    %34 = arith.select %8, %32, %33 : vector<1x32xi1>, vector<1x32xf32>
    %c0_13 = arith.constant 0 : index
    %c0_14 = arith.constant 0 : index
    %35 = vector.load %arg1[%c0_13, %c0_14] : memref<8x32xf32, #tpu.memory_space<vmem>>, vector<8x32xf32>
    %36 = vector.broadcast %34 : vector<1x32xf32> to vector<8x32xf32>
    %37 = arith.mulf %35, %36 : vector<8x32xf32>
    %38 = arith.addf %5, %37 : vector<8x32xf32>
    %c0_15 = arith.constant 0 : index
    %c0_16 = arith.constant 0 : index
    %39 = vector.load %arg4[%c0_15, %c0_16] : memref<32x64xf32, #tpu.memory_space<vmem>>, vector<32x64xf32>
    %cst_17 = arith.constant dense<0.000000e+00> : vector<8x64xf32>
    %40 = tpu.matmul %38, %39, %cst_17 {dimension_numbers = #tpu.dot_dimension_numbers<[1], [0], [0], [1], [0, 0, 1, 1], [], []>} : vector<8x32xf32>, vector<32x64xf32>, vector<8x64xf32> -> vector<8x64xf32>
    %c0_18 = arith.constant 0 : index
    %c0_19 = arith.constant 0 : index
    %41 = vector.load %arg5[%c0_18, %c0_19] : memref<1x64xf32, #tpu.memory_space<vmem>>, vector<1x64xf32>
    %42 = vector.broadcast %41 : vector<1x64xf32> to vector<8x64xf32>
    %43 = arith.addf %40, %42 : vector<8x64xf32>
    %c0_20 = arith.constant 0 : index
    %c0_21 = arith.constant 0 : index
    %44 = vector.load %arg6[%c0_20, %c0_21] : memref<8x64xf32, #tpu.memory_space<vmem>>, vector<8x64xf32>
    tpu.vector_store %arg6[%c0_20, %c0_21], %43 {strides = array<i32>} : memref<8x64xf32, #tpu.memory_space<vmem>>, vector<8x64xf32>,
    return
  }
}

</mosaic_0001>

<bundles_post_ra>
// kernel: _forward_impl.1
= control target key start
LH: loop header
LB: loop body
LE: loop exit
PB: predicated region body
PF: predicated region fallthrough
CT: control target
= control target key end

     0   :  { %v340_v0 = vmov 0.0|0.0   ;;  %vm341_vm0 = vmmov 0   ;;  %v342_v4 = vmov 0.0   ;;  %vm39_vm1 = vcmask 523264   ;;  %s448_s2 = inlined_call_operand.vmem [shape: f32[64,32], index: 2, kind: input, shape index: {}]   ;;  %s449_s0 = inlined_call_operand.vmem [shape: f32[8,64], index: 0, kind: input, shape index: {}]   ;;  %s450_s3 = inlined_call_operand.vmem [shape: f32[1,32], index: 3, kind: input, shape index: {}]   ;;  %s451_s4 = inlined_call_operand.vmem [shape: f32[32,64], index: 4, kind: input, shape index: {}]   ;;  %s452_s1 = inlined_call_operand.vmem [shape: f32[8,32], index: 1, kind: input, shape index: {}]   ;;  %s453_s5 = inlined_call_operand.vmem [shape: f32[1,64], index: 5, kind: input, shape index: {}]   ;;  %s454_s6 = inlined_call_operand.vmem [shape: f32[8,64], index: 6, kind: output, shape index: {}]  }
   0x1   :  { %307 = vmatprep.subr.bf16.mxu0 %v340_v0  ;;  %v24_v1 = vld [vmem:[%s448_s2] sm:$0xff]  ;;  %v25_v2 = vld [vmem:[%s448_s2 + $0x8] sm:$0xff]  ;;  %v26_v3 = vld [vmem:[%s448_s2 + $0x10] sm:$0xff]  ;;  %293 = vmatprep.mubr.msk.f32.mxu0 %vm341_vm0, %v342_v4  ;;  %v113_v15 = vlaneseq  ;;  %vm120_vm3 = vcmask 261120  }
   0x2   :  { %v308_v5 = vpack.c.bf16 %v25_v2, %v24_v1  ;;  %v27_v6 = vld [vmem:[%s448_s2 + $0x18] sm:$0xff]  ;;  %319 = vmatprep.subr.bf16.mxu1 %v340_v0  ;;  %304 = vmatprep.mubr.msk.f32.mxu1 %vm341_vm0, %v342_v4  ;;  %v28_v8 = vld [vmem:[%s448_s2 + $0x20] sm:$0xff]  ;;  %v29_v9 = vld [vmem:[%s448_s2 + $0x28] sm:$0xff] }
   0x3   :  { %v311_v7 = vpack.c.bf16 %v27_v6, %v26_v3  ;;  %v314_v10 = vpack.c.bf16 %v29_v9, %v28_v8  ;;  %v30_v11 = vld [vmem:[%s448_s2 + $0x30] sm:$0xff]  ;;  %v31_v12 = vld [vmem:[%s448_s2 + $0x38] sm:$0xff]  ;;  %v23_v14 = vld [vmem:[%s449_s0] sm:$0xff]  ;;  %v409_v17 = vand.u32 127, %v113_v15 }
   0x4   :  { %309 = vmatpush3.bf16.msra.mxu0 %v308_v5  ;;  %v317_v13 = vpack.c.bf16 %v31_v12, %v30_v11  ;;  %v259_v16 = vld [vmem:[%s450_s3] ss:$0 sm:$0xff]  ;;  %v171_v33 = vld [vmem:[%s451_s4 + $0x8] sm:$0xff]  ;;  %v172_v39 = vld [vmem:[%s451_s4 + $0x10] sm:$0xff] }
   0x5   :  { %310 = vmatprep.subr.bf16.mxu0 %v340_v0  ;;  %vm115_vm2 = vcmp.lt.s32.totalorder %v409_v17, 16  ;;  %v170_v32 = vld [vmem:[%s451_s4] sm:$0xff]  ;;  %v173_v40 = vld [vmem:[%s451_s4 + $0x18] sm:$0xff] }
   0x6   :  { %v320_v34 = vpack.c.bf16 %v171_v33, %v170_v32  ;;  %v323_v41 = vpack.c.bf16 %v173_v40, %v172_v39  ;;  %v167_v58 = vld [vmem:[%s452_s1] sm:$0xff] }
   0x8   :  { %312 = vmatpush3.bf16.msra.mxu0 %v311_v7  ;;  %321 = vmatpush3.bf16.msra.mxu1 %v320_v34 }
   0x9   :  { %313 = vmatprep.subr.bf16.mxu0 %v340_v0  ;;  %322 = vmatprep.subr.bf16.mxu1 %v340_v0 }
   0xc   :  { %315 = vmatpush3.bf16.msra.mxu0 %v314_v10  ;;  %324 = vmatpush3.bf16.msra.mxu1 %v323_v41 }
   0xd   :  { %316 = vmatprep.subr.bf16.mxu0 %v340_v0  ;;  %v261_v0 = vld [vmem:[%s453_s5] ss:$0 sm:$0xff] }
  0x10   :  { %318 = vmatpush3.bf16.msra.mxu0 %v317_v13 }
  0x13   :  { %294 = vmatmul.mubr.msk.f32.vlgmr.msra.gmra.mrb[0].mxu0 %vm39_vm1, %v23_v14 }
  0xe6   :  { %v109_v18 = vpop.f32.mrb[0].mxu0 }
  0xe7   :  { %v411_v19 = vadd.f32 %v259_v16, %v109_v18  ;;  %v295_v20 = vpop.f32.mrb[1].mxu0 }
  0xe9   :  { %v116_v21 = vmul.f32 %v411_v19, %v411_v19 }
  0xeb   :  { %v119_v22 = vsel %vm115_vm2, %v116_v21, 0.0  ;;  %v132_v24 = vsel %vm115_vm2, 0.0, %v116_v21 }
  0xec   :  { %v121_v23 = vsel %vm120_vm3, %v119_v22, 0.0  ;;  %v133_v25 = vsel %vm120_vm3, %v132_v24, 0.0 }
  0xed   :  { %122 = vadd.xlane.f32.xlu0 %v121_v23 }
  0xf1   :  { %134 = vadd.xlane.f32.xlu0 %v133_v25 }
 0x17a   :  { %v123_v26 = vpop.xlane.xlu0 %122 }
 0x17b   :  { %v124_v27 = vrot.slane %v123_v26, 4 }
 0x17d   :  { %v125_v28 = vadd.f32 %v124_v27, %v123_v26 }
 0x17e   :  { %v135_v29 = vpop.xlane.xlu0 %134 }
 0x17f   :  { %v126_v30 = vrot.slane %v125_v28, 2  ;;  %v136_v31 = vrot.slane %v135_v29, 4 }
 0x181   :  { %v137_v35 = vadd.f32 %v136_v31, %v135_v29  ;;  %v127_v36 = vadd.f32 %v126_v30, %v125_v28 }
 0x183   :  { %v138_v37 = vrot.slane %v137_v35, 2  ;;  %v128_v38 = vrot.slane %v127_v36, 1 }
 0x185   :  { %v139_v42 = vadd.f32 %v138_v37, %v137_v35  ;;  %v129_v43 = vadd.f32 %v128_v38, %v127_v36 }
 0x187   :  { %325 = vpush %v129_v43  ;;  %v140_v44 = vrot.slane %v139_v42, 1 }
 0x189   :  { %v141_v45 = vadd.f32 %v140_v44, %v139_v42 }
 0x18b   :  { %327 = vpush %v141_v45 }
 0x1b8   :  { %s326_s22 = spop %325 }
 0x1b9   :  { %s131_s23 = smul.f32 0.0078125, %s326_s22 }
 0x1bb   :  { %s144_s24 = smul.f32 0.1, %s131_s23 }
 0x1bc   :  { %s328_s25 = spop %327 }
 0x1bd   :  { %v145_v46 = vstv %s144_s24  ;;  %s143_s26 = smul.f32 0.0078125, %s328_s25 }
 0x1be   :  { %336 = vrsqrt.f32 %v145_v46  ;;  %vm148_vm4 = vcmp.eq.f32.partialorder %v145_v46, inf  ;;  %v151_v50 = vand.u32 2147483648, %v145_v46  ;;  %vm150_vm5 = vcmp.eq.f32.partialorder %v145_v46, 0.0 }
 0x1bf   :  { %s154_s27 = smul.f32 0.31622776, %s143_s26 }
 0x1c1   :  { %v155_v47 = vstv %s154_s27 }
 0x1c2   :  { %338 = vrsqrt.f32 %v155_v47  ;;  %vm158_vm6 = vcmp.eq.f32.partialorder %v155_v47, inf  ;;  %v161_v55 = vand.u32 2147483648, %v155_v47  ;;  %vm160_vm7 = vcmp.eq.f32.partialorder %v155_v47, 0.0 }
 0x1c8   :  { %v337_v48 = vpop.eup %336 }
 0x1c9   :  { %v147_v49 = vmul.f32 %v337_v48, %v145_v46 }
 0x1cb   :  { %v149_v51 = vsel %vm148_vm4, %v145_v46, %v147_v49 }
 0x1cc   :  { %v339_v52 = vpop.eup %338  ;;  %v152_v53 = vsel %vm150_vm5, %v151_v50, %v149_v51 }
 0x1cd   :  { %329 = vpush %v152_v53  ;;  %v157_v54 = vmul.f32 %v339_v52, %v155_v47 }
 0x1cf   :  { %v159_v56 = vsel %vm158_vm6, %v155_v47, %v157_v54 }
 0x1d0   :  { %v162_v57 = vsel %vm160_vm7, %v161_v55, %v159_v56 }
 0x1d1   :  { %331 = vpush %v162_v57 }
 0x1fe   :  { %s330_s4 = spop %329 }
 0x1ff   :  { %v164_v59 = vstv %s330_s4 }
 0x202   :  { %s332_s28 = spop %331 }
 0x203   :  { %v165_v60 = vstv %s332_s28 }
 0x204   :  { %v166_v61 = vsel %vm115_vm2, %v164_v59, %v165_v60 }
 0x205   :  { %v168_v62 = vmul.f32 %v167_v58, %v166_v61 }
 0x207   :  { %v169_v63 = vadd.f32 %v168_v62, %v411_v19 }
 0x209   :  { %305 = vmatmul.mubr.msk.f32.vlgmr.msra.gmra.mrb[0].mxu1 %vm120_vm3, %v169_v63 }
 0x2dc   :  { %v250_v1 = vpop.f32.mrb[0].mxu1 }
 0x2dd   :  { %v251_v2 = vadd.f32 %v261_v0, %v250_v1  ;;  %v306_v3 = vpop.f32.mrb[1].mxu1 }
 0x2df   :  { %254 = vst.msk [vmem:[%s454_s6] sm:$0xff] %vm39_vm1, %v251_v2 }

</bundles_post_ra>
